<compile_context>
chip_gen: v6e
topology: v6e:2x2x1
jax: 0.10.0
libtpu: 0.0.40
codegen_flags: <defaults>
</compile_context>

<pallas_src>
import jax
import jax.numpy as jnp
from jax.experimental import pallas as pl
from jax.experimental.pallas import tpu as pltpu


def _round_up(x, m):
    return ((x + m - 1) // m) * m


def _vmem_capacity_bytes():
    """Per-core VMEM capacity (128 MiB on v5e/v6e, 64 MiB per TensorCore on v7x)."""
    try:
        cap = getattr(pltpu.get_tpu_info(), "vmem_capacity_bytes", None)
        if cap:
            return int(cap)
    except Exception:  # introspection unavailable; fall through to safe default
        pass
    return 64 << 20  # conservative (v7x-safe) default


# -----------------------------------------------------------------------------
# Kernel body.  Grid = (num_m, num_h); the hidden axis is the reduction axis of
# the second matmul and accumulates into an f32 VMEM scratch.
#   x_ref:  (tm, Dp)   w1_ref: (Dp, tH)  b1_ref: (1, tH)
#   w2_ref: (tH, Dp)   b2_ref: (1, Dp)   o_ref:  (tm, Dp)  acc_ref: (tm, Dp) f32
# -----------------------------------------------------------------------------
def _ffn_kernel(x_ref, w1_ref, b1_ref, w2_ref, b2_ref, o_ref, acc_ref):
    h_idx = pl.program_id(1)

    @pl.when(h_idx == 0)
    def _init():
        # Fold linear2's bias into the accumulator init: saves a (tm, Dp) f32
        # zero-store here and a (tm, Dp) VPU add in the finalize step.
        acc_ref[...] = jnp.broadcast_to(b2_ref[...], acc_ref.shape)

    # linear1 + bias + ReLU for this hidden tile.  MXU accumulates in f32;
    # bias-add / ReLU stay on the f32 VPU path.
    h = jnp.dot(x_ref[...], w1_ref[...], preferred_element_type=jnp.float32)
    h = jnp.maximum(h + b1_ref[...], 0.0)

    # Partial linear2 contribution of this hidden tile.
    acc_ref[...] += jnp.dot(h.astype(w2_ref.dtype), w2_ref[...],
                            preferred_element_type=jnp.float32)

    @pl.when(h_idx == pl.num_programs(1) - 1)
    def _finalize():
        o_ref[...] = acc_ref[...].astype(o_ref.dtype)


def _spec(shape, index_map, mode=None):
    if mode is None:
        return pl.BlockSpec(shape, index_map)
    return pl.BlockSpec(shape, index_map, pipeline_mode=mode)


def prepare_ffn_params(w1, b1, w2, b2, *, compute_dtype=None,
                       weight_budget_bytes=None):
    """One-time weight preparation: pad to lane-dense 128 multiples + cast.

    Hoisted out of feed_forward so repeated (inference) calls do not re-read /
    re-write both weight matrices in HBM every invocation.

    w1: [D, H], b1: [H]   (x @ w1 + b1  ==  torch linear1 with weight [H, D])
    w2: [H, D], b2: [D]
    compute_dtype: MXU operand dtype.  bf16 is the recommended production
        setting on v5e/v6e/v7x (halves HBM traffic / VMEM footprint, native MXU
        rate); accumulation, bias-add and ReLU always stay in f32.
    """
    D, H = w1.shape
    assert w2.shape == (H, D) and b1.shape == (H,) and b2.shape == (D,)

    if compute_dtype is None:
        compute_dtype = w1.dtype
    compute_dtype = jnp.dtype(compute_dtype)
    itemsize = compute_dtype.itemsize

    vmem_cap = _vmem_capacity_bytes()
    if weight_budget_bytes is None:
        # ~55% of per-core VMEM for weight tiles: ~70 MiB on 128 MiB parts
        # (v5e / v6e), ~35 MiB on 64 MiB-per-core v7x.
        weight_budget_bytes = int(0.55 * vmem_cap)

    Dp = _round_up(D, 128)
    Hp = _round_up(H, 128)
    weights_bytes = 2 * Dp * Hp * itemsize  # one copy each of W1 + W2

    if weights_bytes <= weight_budget_bytes:
        # Both weight matrices stay resident in VMEM for the whole grid.
        tH = Hp
        # If the default double-buffered copies also fit, no hint is needed;
        # otherwise request single buffering (pl.Buffered(1)) at call time.
        single_buffer = 2 * weights_bytes > weight_budget_bytes
    else:
        # Stream hidden tiles.  Never drop below 256: tiny tiles shrink the
        # MXU N dim and DMA chunks, and multiply the per-grid-step overhead
        # plus the (tm, Dp) f32 accumulator read-modify-write count.
        tH = 256
        for cand in (2048, 1024, 512, 256):  # largest first, 256-granular
            if 2 * (2 * Dp * cand) * itemsize <= weight_budget_bytes:
                tH = cand
                break
        Hp = _round_up(H, tH)
        single_buffer = False

    w1p = jnp.pad(w1.astype(compute_dtype), ((0, Dp - D), (0, Hp - H)))
    w2p = jnp.pad(w2.astype(compute_dtype), ((0, Hp - H), (0, Dp - D)))
    # Biases kept f32 so bias-add / ReLU stay on the f32 VPU path.
    b1p = jnp.pad(b1.astype(jnp.float32), (0, Hp - H)).reshape(1, Hp)
    b2p = jnp.pad(b2.astype(jnp.float32), (0, Dp - D)).reshape(1, Dp)

    return dict(w1p=w1p, b1p=b1p, w2p=w2p, b2p=b2p, D=D, H=H, Dp=Dp, Hp=Hp,
                tH=tH, single_buffer=single_buffer, compute_dtype=compute_dtype,
                weight_budget_bytes=weight_budget_bytes, vmem_cap=vmem_cap)


def feed_forward(x, params, *, tm=None):
    """Pallas TPU forward pass of FeedForwardLayer: relu(x @ W1 + b1) @ W2 + b2."""
    orig_shape = x.shape
    D, Dp, Hp = params["D"], params["Dp"], params["Hp"]
    assert orig_shape[-1] == D
    compute_dtype = params["compute_dtype"]
    itemsize = compute_dtype.itemsize
    out_dtype = x.dtype
    out_itemsize = jnp.dtype(out_dtype).itemsize
    vmem_cap = params["vmem_cap"]
    vmem_soft_cap = int(0.9 * vmem_cap)

    x2d = x.reshape(-1, D)
    M = x2d.shape[0]

    resident = params["tH"] == Hp
    sublane = 16 if itemsize == 2 else 8
    if tm is None:
        # Resident weights: 256-row tiles (matches the 256x256 MXU on v6e/v7x,
        # halves grid-step count vs 128).  Streamed weights: 512 rows so the
        # per-weight-byte arithmetic intensity (~2*tm/itemsize flop/B) clears
        # the HBM/compute crossover on v5e/v6e/v7x.
        tm = 256 if resident else 512
    tm_eff = max(sublane, min(_round_up(tm, sublane), _round_up(M, sublane)))

    def est_vmem(t, tH, wbufs):
        return (2 * t * Dp * itemsize               # x tile (double-buffered)
                + 2 * t * Dp * out_itemsize         # output tile
                + t * Dp * 4                        # f32 accumulator scratch
                + wbufs * 2 * Dp * tH * itemsize    # W1 + W2 tiles
                + wbufs * 8 * tH * 4 + 2 * 8 * Dp * 4)  # f32 biases

    primary_wbufs = 1 if params["single_buffer"] else 2
    # Shrink the row tile until the working set fits per-core VMEM (matters on
    # v7x's 64 MiB VMEM with large D).
    while (tm_eff > sublane
           and est_vmem(tm_eff, params["tH"], primary_wbufs) > vmem_soft_cap):
        tm_eff = max(sublane, _round_up(tm_eff // 2, sublane))
    # v7x has 2 TensorCores; dimension_semantics shards the "parallel" M axis
    # across them, so ensure it has at least 2 blocks whenever possible.
    while tm_eff > sublane and _round_up(M, tm_eff) // tm_eff < 2:
        tm_eff = max(sublane, _round_up(tm_eff // 2, sublane))
    # TODO(synk): for Dp >= ~8192 on v7x, add an output-column (D) grid axis so
    # the (tm, Dp) f32 accumulator does not force tm back down.

    Mp = _round_up(M, tm_eff)
    num_m = Mp // tm_eff
    xp = jnp.pad(x2d.astype(compute_dtype), ((0, Mp - M), (0, Dp - D)))

    def run(tH, single_buffer):
        num_h = Hp // tH
        wbufs = 1 if single_buffer else 2
        vmem_limit = int(min(vmem_soft_cap,
                             max(est_vmem(tm_eff, tH, wbufs) + (2 << 20),
                                 32 << 20)))
        weight_passes = 1 if num_h == 1 else num_m  # streamed weights re-read per row tile
        cost = pl.CostEstimate(
            flops=4 * Mp * Dp * Hp, transcendentals=0,
            bytes_accessed=int(
                Mp * Dp * itemsize
                + weight_passes * (params["w1p"].size + params["w2p"].size) * itemsize
                + params["b1p"].size * 4 + params["b2p"].size * 4
                + Mp * Dp * out_itemsize))
        # Weight/bias index_maps are grid-invariant on the resident path; the
        # Buffered(1) hint halves their VMEM footprint when requested.
        w_mode = pl.Buffered(1) if single_buffer else None
        grid_spec = pltpu.PrefetchScalarGridSpec(
            num_scalar_prefetch=0,
            grid=(num_m, num_h),
            in_specs=[
                _spec((tm_eff, Dp), lambda i, h: (i, 0)),          # x tile
                _spec((Dp, tH), lambda i, h: (0, h), w_mode),      # W1 tile
                _spec((1, tH), lambda i, h: (0, h), w_mode),       # b1 tile
                _spec((tH, Dp), lambda i, h: (h, 0), w_mode),      # W2 tile
                _spec((1, Dp), lambda i, h: (0, 0), w_mode),       # b2
            ],
            out_specs=pl.BlockSpec((tm_eff, Dp), lambda i, h: (i, 0)),
            scratch_shapes=[pltpu.VMEM((tm_eff, Dp), jnp.float32)],
        )
        return pl.pallas_call(
            _ffn_kernel,
            out_shape=jax.ShapeDtypeStruct((Mp, Dp), out_dtype),
            grid_spec=grid_spec,
            compiler_params=pltpu.CompilerParams(
                dimension_semantics=("parallel", "arbitrary"),
                vmem_limit_bytes=vmem_limit),
            cost_estimate=cost,
        )(xp, params["w1p"], params["b1p"], params["w2p"], params["b2p"])

    if params["single_buffer"]:
        try:
            out = run(Hp, True)
        except Exception:
            # Narrow fallback: Buffered(1) is purely a VMEM-footprint hint.  If
            # this JAX version rejects it, stream hidden tiles within the same
            # weight budget with default double-buffering; any genuine compile
            # failure re-raises from the call below.
            tH_fb = 128
            for cand in (2048, 1024, 512, 256):
                if Hp % cand == 0 and (2 * (2 * Dp * cand) * itemsize
                                       <= params["weight_budget_bytes"]):
                    tH_fb = cand
                    break
            out = run(tH_fb, False)
    else:
        out = run(params["tH"], False)

    return out[:M, :D].reshape(orig_shape)


def init_params(key, input_dim, hidden_dim):
    # Deterministic synthetic init (torch LazyLinear uses kaiming-uniform;
    # exact init values are irrelevant for kernel semantics).
    k1, k2, k3, k4 = jax.random.split(key, 4)
    s1 = 1.0 / jnp.sqrt(input_dim)
    s2 = 1.0 / jnp.sqrt(hidden_dim)
    w1 = jax.random.uniform(k1, (input_dim, hidden_dim), jnp.float32, -s1, s1)
    b1 = jax.random.uniform(k2, (hidden_dim,), jnp.float32, -s1, s1)
    w2 = jax.random.uniform(k3, (hidden_dim, input_dim), jnp.float32, -s2, s2)
    b2 = jax.random.uniform(k4, (input_dim,), jnp.float32, -s2, s2)
    return w1, b1, w2, b2


if __name__ == "__main__":
    # Small shapes; seq=7 makes batch*seq=14 non-divisible -> exercises row
    # padding and the >=2-M-blocks guard.
    batch, seq, input_dim, hidden_dim = 2, 7, 32, 512

    key = jax.random.PRNGKey(0)
    kx, kp = jax.random.split(key)
    x = jax.random.normal(kx, (batch, seq, input_dim), jnp.float32)
    w1, b1, w2, b2 = init_params(kp, input_dim, hidden_dim)

    # Plain-JAX reference (same math as the PyTorch module).
    ref = jnp.maximum(x @ w1 + b1, 0.0) @ w2 + b2

    # 1) f32, weights resident in VMEM (typical small/medium FFN).
    params = prepare_ffn_params(w1, b1, w2, b2)
    out = jax.block_until_ready(feed_forward(x, params))
    assert out.shape == x.shape
    assert jnp.allclose(out, ref, atol=2e-4, rtol=2e-4), "resident path mismatch"

    # 2) force the H-tiled streaming path (what very large D/H uses).
    params_tiled = prepare_ffn_params(w1, b1, w2, b2,
                                      weight_budget_bytes=256 * 1024)
    out_tiled = jax.block_until_ready(feed_forward(x, params_tiled))
    assert jnp.allclose(out_tiled, ref, atol=2e-4, rtol=2e-4), "tiled path mismatch"

    # 3) bf16 MXU operands with f32 accumulation (recommended production mode).
    params_bf16 = prepare_ffn_params(w1, b1, w2, b2, compute_dtype=jnp.bfloat16)
    out_bf16 = jax.block_until_ready(feed_forward(x, params_bf16))
    assert jnp.allclose(out_bf16, ref, atol=5e-2, rtol=5e-2), "bf16 path mismatch"

    print("KERNEL_OK")
</pallas_src>

<mosaic_0001>
module attributes {stable_mosaic.version = 11 : i64} {
  func.func @_ffn_kernel(%arg0: i32, %arg1: i32, %arg2: memref<8x128xf32, #tpu.memory_space<vmem>>, %arg3: memref<128x512xf32, #tpu.memory_space<vmem>>, %arg4: memref<1x512xf32, #tpu.memory_space<vmem>>, %arg5: memref<512x128xf32, #tpu.memory_space<vmem>>, %arg6: memref<1x128xf32, #tpu.memory_space<vmem>>, %arg7: memref<8x128xf32, #tpu.memory_space<vmem>>, %arg8: memref<8x128xf32, #tpu.memory_space<vmem>>) attributes {dimension_semantics = [#tpu.dimension_semantics<parallel>, #tpu.dimension_semantics<arbitrary>], iteration_bounds = array<i64: 2, 1>, scalar_prefetch = 0 : i64, scratch_operands = 1 : i64, tpu.core_type = #tpu.core_type<tc>, window_params = [{transform_indices = @transform_0, window_bounds = array<i64: 8, 128>}, {transform_indices = @transform_1, window_bounds = array<i64: 128, 512>}, {transform_indices = @transform_2, window_bounds = array<i64: 1, 512>}, {transform_indices = @transform_3, window_bounds = array<i64: 512, 128>}, {pipeline_mode = #tpu.pipeline_mode<synchronous>, transform_indices = @transform_4, window_bounds = array<i64: 1, 128>}, {transform_indices = @transform_5, window_bounds = array<i64: 8, 128>}]} {
    %c0_i32 = arith.constant 0 : i32
    %0 = arith.cmpi eq, %arg1, %c0_i32 : i32
    %1 = arith.extui %0 : i1 to i32
    %c0_i32_0 = arith.constant 0 : i32
    %2 = arith.cmpi ne, %1, %c0_i32_0 : i32
    scf.if %2 {
      %c0_16 = arith.constant 0 : index
      %c0_17 = arith.constant 0 : index
      %19 = vector.load %arg6[%c0_16, %c0_17] : memref<1x128xf32, #tpu.memory_space<vmem>>, vector<1x128xf32>
      %20 = vector.shape_cast %19 : vector<1x128xf32> to vector<1x128xf32>
      %21 = vector.broadcast %20 : vector<1x128xf32> to vector<8x128xf32>
      %c0_18 = arith.constant 0 : index
      %c0_19 = arith.constant 0 : index
      %22 = vector.load %arg8[%c0_18, %c0_19] : memref<8x128xf32, #tpu.memory_space<vmem>>, vector<8x128xf32>
      tpu.vector_store %arg8[%c0_18, %c0_19], %21 {strides = array<i32>} : memref<8x128xf32, #tpu.memory_space<vmem>>, vector<8x128xf32>,
    } else {
    }
    %c0 = arith.constant 0 : index
    %c0_1 = arith.constant 0 : index
    %3 = vector.load %arg2[%c0, %c0_1] : memref<8x128xf32, #tpu.memory_space<vmem>>, vector<8x128xf32>
    %c0_2 = arith.constant 0 : index
    %c0_3 = arith.constant 0 : index
    %4 = vector.load %arg3[%c0_2, %c0_3] : memref<128x512xf32, #tpu.memory_space<vmem>>, vector<128x512xf32>
    %cst = arith.constant dense<0.000000e+00> : vector<8x512xf32>
    %5 = tpu.matmul %3, %4, %cst {dimension_numbers = #tpu.dot_dimension_numbers<[1], [0], [0], [1], [0, 0, 1, 1], [], []>} : vector<8x128xf32>, vector<128x512xf32>, vector<8x512xf32> -> vector<8x512xf32>
    %c0_4 = arith.constant 0 : index
    %c0_5 = arith.constant 0 : index
    %6 = vector.load %arg4[%c0_4, %c0_5] : memref<1x512xf32, #tpu.memory_space<vmem>>, vector<1x512xf32>
    %7 = vector.broadcast %6 : vector<1x512xf32> to vector<8x512xf32>
    %8 = arith.addf %5, %7 : vector<8x512xf32>
    %cst_6 = arith.constant 0.000000e+00 : f32
    %9 = vector.broadcast %cst_6 : f32 to vector<8x512xf32>
    %10 = arith.maximumf %8, %9 : vector<8x512xf32>
    %c0_7 = arith.constant 0 : index
    %c0_8 = arith.constant 0 : index
    %11 = vector.load %arg8[%c0_7, %c0_8] : memref<8x128xf32, #tpu.memory_space<vmem>>, vector<8x128xf32>
    %c0_9 = arith.constant 0 : index
    %c0_10 = arith.constant 0 : index
    %12 = vector.load %arg5[%c0_9, %c0_10] : memref<512x128xf32, #tpu.memory_space<vmem>>, vector<512x128xf32>
    %cst_11 = arith.constant dense<0.000000e+00> : vector<8x128xf32>
    %13 = tpu.matmul %10, %12, %cst_11 {dimension_numbers = #tpu.dot_dimension_numbers<[1], [0], [0], [1], [0, 0, 1, 1], [], []>} : vector<8x512xf32>, vector<512x128xf32>, vector<8x128xf32> -> vector<8x128xf32>
    %14 = arith.addf %11, %13 : vector<8x128xf32>
    %c0_12 = arith.constant 0 : index
    %c0_13 = arith.constant 0 : index
    %15 = vector.load %arg8[%c0_12, %c0_13] : memref<8x128xf32, #tpu.memory_space<vmem>>, vector<8x128xf32>
    tpu.vector_store %arg8[%c0_12, %c0_13], %14 {strides = array<i32>} : memref<8x128xf32, #tpu.memory_space<vmem>>, vector<8x128xf32>,
    %c0_i32_14 = arith.constant 0 : i32
    %16 = arith.cmpi eq, %arg1, %c0_i32_14 : i32
    %17 = arith.extui %16 : i1 to i32
    %c0_i32_15 = arith.constant 0 : i32
    %18 = arith.cmpi ne, %17, %c0_i32_15 : i32
    scf.if %18 {
      %c0_16 = arith.constant 0 : index
      %c0_17 = arith.constant 0 : index
      %19 = vector.load %arg8[%c0_16, %c0_17] : memref<8x128xf32, #tpu.memory_space<vmem>>, vector<8x128xf32>
      %c0_18 = arith.constant 0 : index
      %c0_19 = arith.constant 0 : index
      %20 = vector.load %arg7[%c0_18, %c0_19] : memref<8x128xf32, #tpu.memory_space<vmem>>, vector<8x128xf32>
      tpu.vector_store %arg7[%c0_18, %c0_19], %19 {strides = array<i32>} : memref<8x128xf32, #tpu.memory_space<vmem>>, vector<8x128xf32>,
    } else {
    }
    return
  }
  func.func @transform_0(%arg0: i32, %arg1: i32) -> (i32, i32) {
    %c0_i32 = arith.constant 0 : i32
    %c0_i32_0 = arith.constant 0 : i32
    return %arg0, %c0_i32 : i32, i32
  }
  func.func @transform_1(%arg0: i32, %arg1: i32) -> (i32, i32) {
    %c0_i32 = arith.constant 0 : i32
    %c0_i32_0 = arith.constant 0 : i32
    return %c0_i32, %arg1 : i32, i32
  }
  func.func @transform_2(%arg0: i32, %arg1: i32) -> (i32, i32) {
    %c0_i32 = arith.constant 0 : i32
    %c0_i32_0 = arith.constant 0 : i32
    return %c0_i32, %arg1 : i32, i32
  }
  func.func @transform_3(%arg0: i32, %arg1: i32) -> (i32, i32) {
    %c0_i32 = arith.constant 0 : i32
    %c0_i32_0 = arith.constant 0 : i32
    return %arg1, %c0_i32 : i32, i32
  }
  func.func @transform_4(%arg0: i32, %arg1: i32) -> (i32, i32) {
    %c0_i32 = arith.constant 0 : i32
    %c0_i32_0 = arith.constant 0 : i32
    %c0_i32_1 = arith.constant 0 : i32
    return %c0_i32, %c0_i32_0 : i32, i32
  }
  func.func @transform_5(%arg0: i32, %arg1: i32) -> (i32, i32) {
    %c0_i32 = arith.constant 0 : i32
    %c0_i32_0 = arith.constant 0 : i32
    return %arg0, %c0_i32 : i32, i32
  }
}

</mosaic_0001>

<bundles_post_ra>
// kernel: tpu_custom_call.1
= control target key start
LH: loop header
LB: loop body
LE: loop exit
PB: predicated region body
PF: predicated region fallthrough
CT: control target
= control target key end

     0   :  { %s1525_s0 = inlined_call_operand.hbm [shape: f32[16,128], index: 0, kind: input, shape index: {}]   ;;  %s1526_s1 = inlined_call_operand.hbm [shape: f32[128,512], index: 1, kind: input, shape index: {}]   ;;  %s1527_s2 = inlined_call_operand.hbm [shape: f32[1,512], index: 2, kind: input, shape index: {}]   ;;  %s1528_s3 = inlined_call_operand.hbm [shape: f32[512,128], index: 3, kind: input, shape index: {}]   ;;  %s1529_s4 = inlined_call_operand.vmem [shape: f32[1,128], index: 4, kind: input, shape index: {}]   ;;  %s1530_s5 = inlined_call_operand.hbm [shape: f32[16,128], index: 5, kind: output, shape index: {}]  }
   0x1   :  { %1535 = sst [smem:[#allocation16_spill]] %s1526_s1 }
   0x2   :  { %10 = vsyncpa [#allocation4], 0 }
   0x3   :  { %12 = vsyncpa [#allocation4 + $0x1], 0 }
   0x4   :  { %13 = vsyncpa [#allocation7], 0 }
   0x5   :  { %14 = vsyncpa [#allocation10], 0 }
   0x6   :  { %15 = vsyncpa [#allocation5], 0 }
   0x7   :  { %17 = vsyncpa [#allocation5 + $0x1], 0  ;;  %s1329_s18 = smov 0   ;;  %s1331_s19 = smov 0  }
   0x8   :  { %s1333_s20 = smov 0   ;;  %s1335_s21 = smov 0  }
   0x9   :  { %s1337_s22 = smov 0   ;;  %s1339_s23 = smov 0  }
   0xa LB: > { %s905_s24 = sadd.s32 4294967295, %s1287_s23   ;;  %s906_s25 = sadd.s32 4294967294, %s1287_s23   ;;  %s1287_s23 = sphi %s1339_s23, %s23_s23   ;;  %s1283_s22 = sphi %s1337_s22, %s1554_s22   ;;  %s1279_s21 = sphi %s1335_s21, %s1553_s21   ;;  %s1275_s20 = sphi %s1333_s20, %s1552_s20   ;;  %s1271_s19 = sphi %s1331_s19, %s1551_s19   ;;  %s1267_s18 = sphi %s1329_s18, %s1550_s18  }
   0xb   : > { %p55_p0 = scmp.ne.s32.totalorder %s1271_s19, %s1267_s18  ;;  %p1363_p1 = scmp.eq.s32.totalorder %s905_s24, 0 }
   0xc   : > { %p1367_p2 = scmp.eq.s32.totalorder %s905_s24, 1  ;;  %p184_p3 = scmp.eq.s32.totalorder %s906_s25, 1 }
   0xd   : > { %s1536_s26 = scalar_select %p1363_p1, 1, 0 }
   0xe   : > { %p1373_p4 = por %p1363_p1, %p55_p0  ;;  %p907_p5 = scmp.ge.s32.totalorder %s1287_s23, 1 }
   0xf   : > { %p1378_p6 = por %p184_p3, %p55_p0  ;;  %p191_p7 = scmp.lt.s32.totalorder %s1287_s23, 3 }
  0x10   : > { %s1538_s28 = scalar_select %p1373_p4, 1, 0 }
  0x11   : > { %s1539_s29 = scalar_select %p1378_p6, 1, 0 }
  0x12   : > { %p1383_p8 = pnand %p907_p5, %p191_p7  ;;  %s1289_s6 = smov [#allocation6]  }
  0x13   : > { %s206_s7 = sshll.u32 %s1289_s6, 4  ;;  %s1290_s9 = smov [#allocation8]   ;;  %s207_s7 = int_to_ptr.vmem [resolvable:$true] %s206_s7 }
  0x14   : > { %s1540_s30 = scalar_select %p1383_p8, 1, 0 }
  0x15   : > { %p1011_p9 = pneg %p1383_p8  ;;  %s223_s10 = sshll.u32 %s1290_s9, 4  ;;  %s224_s10 = int_to_ptr.vmem [resolvable:$true] %s223_s10 }
  0x16   : > { %s1291_s11 = smov [#allocation9]   ;;  %s1104_s13 = scalar_lea.vmem %s207_s7, 8192 }
  0x17   : > { %p1392_p11 = pnand %p1011_p9, %p1363_p1  ;;  %s236_s12 = sshll.u32 %s1291_s11, 4  ;;  %s237_s12 = int_to_ptr.vmem [resolvable:$true] %s236_s12 }
  0x18   : > { %p1105_p13 = scmp.ne.s32.totalorder %s207_s7, %s1104_s13  ;;  %p1112_p5 = scmp.lt.s32.totalorder %s207_s7, %s207_s7 }
  0x19   : > { %p1095_p12 = pneg %p1392_p11  ;;  %p1113_p7 = scmp.lt.s32.totalorder %s1104_s13, %s1104_s13 }
  0x1b   : > { %p1107_p0 = pnand %p1105_p13, %p1095_p12  ;;  %p1114_p9 = por %p1113_p7, %p1112_p5 }
  0x1d   : > { %p1108_p3 = pneg %p1107_p0 }
  0x1f   : > { %p1115_p10 = pnand %p1114_p9, %p1108_p3 }
  0x21   : > { %1118 = shalt.err (!%p1115_p10)
}
  0x22   : > { %s1292_s14 = smov 512   ;;  %s1293_s15 = smov 32  }
  0x23   : > { %s1542_s1 = sld [smem:[#allocation16_spill]]  ;;  %s1130_s24 = scalar_lea.vmem %s224_s10, 64 }
  0x24   : > { %p1131_p6 = scmp.ne.s32.totalorder %s224_s10, %s1130_s24  ;;  %p1138_p1 = scmp.lt.s32.totalorder %s224_s10, %s224_s10 }
  0x25   : > { %p1139_p4 = scmp.lt.s32.totalorder %s1130_s24, %s1130_s24 }
  0x26   : > { %p1133_p13 = pnand %p1131_p6, %p1095_p12 }
  0x27   : > { %p1140_p5 = por %p1139_p4, %p1138_p1 }
  0x28   : > { %p1134_p0 = pneg %p1133_p13 }
  0x29   : > { %1014 = dma.hbm_to_vmem [thread:$0]  (!%p1392_p11), %s1542_s1, 8192, %s207_s7, [#allocation7], %s1292_s14, %s1292_s14, %s1293_s15  }
  0x2a   : > { %p1141_p3 = pnand %p1140_p5, %p1134_p0 }
  0x2c   : > { %1144 = shalt.err (!%p1141_p3)
}
  0x2d   : > { %1017 = dma.hbm_to_vmem [thread:$0]  (!%p1392_p11), %s1527_s2, 64, %s224_s10, [#allocation7]  }
  0x2e   : > { %s1156_s7 = scalar_lea.vmem %s237_s12, 8192  ;;  %p1164_p9 = scmp.lt.s32.totalorder %s237_s12, %s237_s12 }
  0x2f   : > { %p1157_p10 = scmp.ne.s32.totalorder %s237_s12, %s1156_s7  ;;  %p1165_p13 = scmp.lt.s32.totalorder %s1156_s7, %s1156_s7 }
  0x31   : > { %p1159_p7 = pnand %p1157_p10, %p1095_p12  ;;  %p1166_p8 = por %p1165_p13, %p1164_p9 }
  0x33   : > { %p1160_p6 = pneg %p1159_p7 }
  0x35   : > { %p1167_p1 = pnand %p1166_p8, %p1160_p6 }
  0x37   : > { %1170 = shalt.err (!%p1167_p1)
}
  0x38   : > { %s1294_s9 = smov 128   ;;  %s1295_s10 = smov 8  }
  0x39   : > { %1020 = dma.hbm_to_vmem [thread:$0]  (!%p1392_p11), %s1528_s3, 8192, %s237_s12, [#allocation10], %s1294_s9, %s1294_s9, %s1295_s10  }
  0x3a   : > { %s42_s14 = sadd.s32 1, %s1275_s20  ;;  %s35_s15 = sadd.s32 1, %s1283_s22 }
  0x3b   : > { %p49_p4 = scmp.ne.s32.totalorder %s1275_s20, %s1271_s19  ;;  %p37_p8 = scmp.ge.s32.totalorder %s35_s15, 2 }
  0x3c   : > { %p50_p12 = scmp.eq.s32.totalorder %s1287_s23, 0  ;;  %p1032_p5 = scmp.lt.s32.totalorder %s1287_s23, 2 }
  0x3d   : > { %p1429_p0 = por %p1367_p2, %p49_p4  ;;  %s1556_s15 = smov (%p37_p8, %s35_s15), 0 }
  0x3e   : > { %p51_p3 = por %p50_p12, %p49_p4  ;;  %s253_s8 = sand.u32 1, %s1275_s20  }
  0x3f   : > { %s39_s17 = ssub.s32 %s1283_s22, %s1556_s15  ;;  %s912_s12 = sshll.u32 %s253_s8, 3 }
  0x40   : > { %p40_p10 = scmp.eq.s32.totalorder %s39_s17, 0  ;;  %s913_s24 = sshll.u32 %s1283_s22, 7 }
  0x41   : > { %s262_s27 = scalar_lea.hbm %s1525_s0, %s913_s24  ;;  %s257_s9 = scalar_lea.vmem [#allocation3], %s912_s12 }
  0x42   : > { %s1441_s25 = scalar_select %p40_p10, %s1275_s20, %s42_s14  }
  0x43   : > { %s264_s10 = sshll.u32 %s257_s9, 4  ;;  %p1448_p2 = pnand %p1032_p5, %p51_p3  ;;  %s265_s10 = int_to_ptr.vmem [resolvable:$true] %s264_s10 }
  0x44   : > { %s254_s13 = scalar_lea.sflag [#allocation4], %s253_s8  ;;  %s1184_s17 = scalar_lea.vmem %s265_s10, 128 }
  0x45   : > { %p1173_p11 = pneg %p1448_p2  ;;  %p1185_p7 = scmp.ne.s32.totalorder %s265_s10, %s1184_s17 }
  0x46   : > { %s1296_s14 = smov [#allocation3]  }
  0x47   : > { %p1187_p6 = pnand %p1185_p7, %p1173_p11  ;;  %s1189_s1 = sshll.u32 %s1296_s14, 4  ;;  %s1190_s1 = int_to_ptr.vmem [resolvable:$false] %s1189_s1 }
  0x48   : > { %s1191_s24 = scalar_lea.vmem %s1190_s1, 256  ;;  %p1192_p13 = scmp.lt.s32.totalorder %s265_s10, %s1190_s1 }
  0x49   : > { %p1188_p9 = pneg %p1187_p6  ;;  %p1193_p1 = scmp.lt.s32.totalorder %s1191_s24, %s1184_s17 }
  0x4b   : > { %p1194_p4 = por %p1193_p1, %p1192_p13 }
  0x4d   : > { %p1195_p8 = pnand %p1194_p4, %p1188_p9 }
  0x4f   : > { %1198 = shalt.err (!%p1195_p8)
}
  0x50   : > { %1024 = dma.hbm_to_vmem [thread:$0]  (!%p1448_p2), %s262_s27, 128, %s265_s10, %s254_s13  }
  0x51   : > { %p1545_p12 = scmp.ne.s32.totalorder %s1540_s30, 0 }
  0x52   : > { %s1459_s8 = sand.u32 (!%p1545_p12), 1, %s1271_s19   ;;  %p1546_p5 = scmp.ne.s32.totalorder (!%p1545_p12), %s1538_s28, 0 }
  0x53   : > { %273 = sbr.rel (%p1545_p12) target bundleno = 542 (0x21e), region = 40  ;;  %s915_s12 = sshll.u32 (!%p1545_p12), %s1459_s8, 3 }
  0x54   : > { %s276_s6 = scalar_lea.sflag (!%p1545_p12), [#allocation4], %s1459_s8  ;;  %s1465_s1 = scalar_lea.vmem (!%p1545_p12), [#allocation3], %s915_s12 }
  0x58   : > { %1250 = dma.done.wait (%p1546_p5), %s276_s6, 128  }
  0x59   : > { %1252 = vsyncadd (%p1546_p5), %s276_s6, 4294967168  ;;  %p1547_p3 = scmp.ne.s32.totalorder %s1536_s26, 0 }
  0x5b   : > { %1254 = dma.done.wait (%p1547_p3), [#allocation7], 8256  }
  0x5c   : > { %1256 = vsyncadd (%p1547_p3), [#allocation7], 4294959040 }
  0x5d   : > { %1258 = dma.done.wait (%p1547_p3), [#allocation10], 8192  }
  0x5e   : > { %1260 = vsyncadd (%p1547_p3), [#allocation10], 4294959104  ;;  %v1297_v0 = vmov 0.0   ;;  %v395_v1 = vld [vmem:[#allocation6 + $0x1e8] sm:$0xff]  ;;  %v397_v2 = vld [vmem:[#allocation6 + $0x1f8] sm:$0xff]  ;;  %s922_s30 = sshll.u32 %s1279_s21, 7 }
  0x5f   : > { %484 = vmatprep.mubr.f32.mxu0 %v1297_v0  ;;  %555 = vmatprep.mubr.f32.mxu1 %v1297_v0  ;;  %v394_v3 = vld [vmem:[#allocation6 + $0x1e0] sm:$0xff]  ;;  %v396_v4 = vld [vmem:[#allocation6 + $0x1f0] sm:$0xff]  ;;  %v391_v5 = vld [vmem:[#allocation6 + $0x1c8] sm:$0xff]  ;;  %s317_s7 = scalar_lea.vmem [#allocation11], %s915_s12  ;;  %s790_s11 = scalar_lea.hbm %s1530_s5, %s922_s30 }
  0x60   : > { %420 = vmatprep.subr.mxu0 %v395_v1  ;;  %491 = vmatprep.subr.mxu1 %v397_v2  ;;  %v393_v6 = vld [vmem:[#allocation6 + $0x1d8] sm:$0xff]  ;;  %v390_v7 = vld [vmem:[#allocation6 + $0x1c0] sm:$0xff]  ;;  %v392_v8 = vld [vmem:[#allocation6 + $0x1d0] sm:$0xff]  ;;  %s792_s27 = sshll.u32 %s317_s7, 4  ;;  %s779_s13 = scalar_lea.sflag [#allocation5], %s1459_s8  ;;  %s793_s27 = int_to_ptr.vmem [resolvable:$true] %s792_s27 }
  0x61   : > { %421 = vmatpush1.msra.mxu0 %v394_v3  ;;  %492 = vmatpush1.msra.mxu1 %v396_v4  ;;  %v387_v9 = vld [vmem:[#allocation6 + $0x1a8] sm:$0xff]  ;;  %v389_v10 = vld [vmem:[#allocation6 + $0x1b8] sm:$0xff]  ;;  %v386_v11 = vld [vmem:[#allocation6 + $0x1a0] sm:$0xff]  ;;  %s1199_s17 = scalar_lea.vmem %s793_s27, 128  ;;  %s1298_s14 = smov [#allocation11]  }
  0x62   : > { %422 = vmatprep.subr.mxu0 %v391_v5  ;;  %493 = vmatprep.subr.mxu1 %v393_v6  ;;  %v388_v12 = vld [vmem:[#allocation6 + $0x1b0] sm:$0xff]  ;;  %v383_v13 = vld [vmem:[#allocation6 + $0x188] sm:$0xff]  ;;  %v385_v14 = vld [vmem:[#allocation6 + $0x198] sm:$0xff]  ;;  %p1200_p10 = scmp.ne.s32.totalorder %s793_s27, %s1199_s17  ;;  %s1203_s24 = sshll.u32 %s1298_s14, 4  ;;  %s1204_s24 = int_to_ptr.vmem [resolvable:$false] %s1203_s24 }
  0x63   : > { %423 = vmatpush1.msra.mxu0 %v390_v7  ;;  %494 = vmatpush1.msra.mxu1 %v392_v8  ;;  %v382_v15 = vld [vmem:[#allocation6 + $0x180] sm:$0xff]  ;;  %v384_v16 = vld [vmem:[#allocation6 + $0x190] sm:$0xff]  ;;  %v379_v17 = vld [vmem:[#allocation6 + $0x168] sm:$0xff]  ;;  %s1205_s21 = scalar_lea.vmem %s1204_s24, 256  ;;  %p1206_p7 = scmp.lt.s32.totalorder %s793_s27, %s1204_s24 }
  0x64   : > { %424 = vmatprep.subr.mxu0 %v387_v9  ;;  %495 = vmatprep.subr.mxu1 %v389_v10  ;;  %v381_v18 = vld [vmem:[#allocation6 + $0x178] sm:$0xff]  ;;  %v378_v19 = vld [vmem:[#allocation6 + $0x160] sm:$0xff]  ;;  %v380_v20 = vld [vmem:[#allocation6 + $0x170] sm:$0xff]  ;;  %p1201_p2 = pnand %p1200_p10, %p1429_p0  ;;  %p1207_p6 = scmp.lt.s32.totalorder %s1205_s21, %s1199_s17 }
  0x65   : > { %425 = vmatpush1.msra.mxu0 %v386_v11  ;;  %496 = vmatpush1.msra.mxu1 %v388_v12  ;;  %v375_v21 = vld [vmem:[#allocation6 + $0x148] sm:$0xff]  ;;  %v377_v22 = vld [vmem:[#allocation6 + $0x158] sm:$0xff]  ;;  %v374_v23 = vld [vmem:[#allocation6 + $0x140] sm:$0xff] }
  0x66   : > { %426 = vmatprep.subr.mxu0 %v383_v13  ;;  %497 = vmatprep.subr.mxu1 %v385_v14  ;;  %v376_v24 = vld [vmem:[#allocation6 + $0x150] sm:$0xff]  ;;  %v371_v25 = vld [vmem:[#allocation6 + $0x128] sm:$0xff]  ;;  %v373_v26 = vld [vmem:[#allocation6 + $0x138] sm:$0xff]  ;;  %p1202_p11 = pneg %p1201_p2  ;;  %p1208_p9 = por %p1207_p6, %p1206_p7 }
  0x67   : > { %427 = vmatpush1.msra.mxu0 %v382_v15  ;;  %498 = vmatpush1.msra.mxu1 %v384_v16  ;;  %v370_v27 = vld [vmem:[#allocation6 + $0x120] sm:$0xff]  ;;  %v372_v28 = vld [vmem:[#allocation6 + $0x130] sm:$0xff]  ;;  %v367_v29 = vld [vmem:[#allocation6 + $0x108] sm:$0xff] }
  0x68   : > { %428 = vmatprep.subr.mxu0 %v379_v17  ;;  %499 = vmatprep.subr.mxu1 %v381_v18  ;;  %v369_v30 = vld [vmem:[#allocation6 + $0x118] sm:$0xff]  ;;  %v366_v31 = vld [vmem:[#allocation6 + $0x100] sm:$0xff]  ;;  %v368_v32 = vld [vmem:[#allocation6 + $0x110] sm:$0xff]  ;;  %p1209_p13 = pnand %p1208_p9, %p1202_p11 }
  0x69   : > { %429 = vmatpush1.msra.mxu0 %v378_v19  ;;  %500 = vmatpush1.msra.mxu1 %v380_v20  ;;  %v363_v33 = vld [vmem:[#allocation6 + $0xe8] sm:$0xff]  ;;  %v365_v34 = vld [vmem:[#allocation6 + $0xf8] sm:$0xff]  ;;  %v362_v35 = vld [vmem:[#allocation6 + $0xe0] sm:$0xff] }
  0x6a   : > { %430 = vmatprep.subr.mxu0 %v375_v21  ;;  %501 = vmatprep.subr.mxu1 %v377_v22  ;;  %v364_v36 = vld [vmem:[#allocation6 + $0xf0] sm:$0xff]  ;;  %v359_v37 = vld [vmem:[#allocation6 + $0xc8] sm:$0xff]  ;;  %v361_v38 = vld [vmem:[#allocation6 + $0xd8] sm:$0xff] }
  0x6b   : > { %431 = vmatpush1.msra.mxu0 %v374_v23  ;;  %502 = vmatpush1.msra.mxu1 %v376_v24  ;;  %v358_v39 = vld [vmem:[#allocation6 + $0xc0] sm:$0xff]  ;;  %v360_v40 = vld [vmem:[#allocation6 + $0xd0] sm:$0xff]  ;;  %v355_v41 = vld [vmem:[#allocation6 + $0xa8] sm:$0xff] }
  0x6c   : > { %432 = vmatprep.subr.mxu0 %v371_v25  ;;  %503 = vmatprep.subr.mxu1 %v373_v26  ;;  %v357_v42 = vld [vmem:[#allocation6 + $0xb8] sm:$0xff]  ;;  %v354_v43 = vld [vmem:[#allocation6 + $0xa0] sm:$0xff]  ;;  %v356_v44 = vld [vmem:[#allocation6 + $0xb0] sm:$0xff] }
  0x6d   : > { %433 = vmatpush1.msra.mxu0 %v370_v27  ;;  %504 = vmatpush1.msra.mxu1 %v372_v28  ;;  %v351_v45 = vld [vmem:[#allocation6 + $0x88] sm:$0xff]  ;;  %v353_v46 = vld [vmem:[#allocation6 + $0x98] sm:$0xff]  ;;  %v350_v47 = vld [vmem:[#allocation6 + $0x80] sm:$0xff] }
  0x6e   : > { %434 = vmatprep.subr.mxu0 %v367_v29  ;;  %505 = vmatprep.subr.mxu1 %v369_v30  ;;  %v352_v48 = vld [vmem:[#allocation6 + $0x90] sm:$0xff]  ;;  %v347_v49 = vld [vmem:[#allocation6 + $0x68] sm:$0xff]  ;;  %v349_v50 = vld [vmem:[#allocation6 + $0x78] sm:$0xff] }
  0x6f   : > { %435 = vmatpush1.msra.mxu0 %v366_v31  ;;  %506 = vmatpush1.msra.mxu1 %v368_v32  ;;  %v346_v51 = vld [vmem:[#allocation6 + $0x60] sm:$0xff]  ;;  %v348_v52 = vld [vmem:[#allocation6 + $0x70] sm:$0xff]  ;;  %v343_v53 = vld [vmem:[#allocation6 + $0x48] sm:$0xff] }
  0x70   : > { %436 = vmatprep.subr.mxu0 %v363_v33  ;;  %507 = vmatprep.subr.mxu1 %v365_v34  ;;  %v345_v54 = vld [vmem:[#allocation6 + $0x58] sm:$0xff]  ;;  %v342_v55 = vld [vmem:[#allocation6 + $0x40] sm:$0xff]  ;;  %v344_v56 = vld [vmem:[#allocation6 + $0x50] sm:$0xff] }
  0x71   : > { %437 = vmatpush1.msra.mxu0 %v362_v35  ;;  %508 = vmatpush1.msra.mxu1 %v364_v36  ;;  %v339_v57 = vld [vmem:[#allocation6 + $0x28] sm:$0xff]  ;;  %v341_v58 = vld [vmem:[#allocation6 + $0x38] sm:$0xff]  ;;  %v338_v59 = vld [vmem:[#allocation6 + $0x20] sm:$0xff] }
  0x72   : > { %438 = vmatprep.subr.mxu0 %v359_v37  ;;  %509 = vmatprep.subr.mxu1 %v361_v38  ;;  %v340_v60 = vld [vmem:[#allocation6 + $0x30] sm:$0xff]  ;;  %v335_v61 = vld [vmem:[#allocation6 + $0x8] sm:$0xff]  ;;  %v337_v62 = vld [vmem:[#allocation6 + $0x18] sm:$0xff] }
  0x73   : > { %439 = vmatpush1.msra.mxu0 %v358_v39  ;;  %510 = vmatpush1.msra.mxu1 %v360_v40  ;;  %v334_v63 = vld [vmem:[#allocation6] sm:$0xff]  ;;  %v336_v0 = vld [vmem:[#allocation6 + $0x10] sm:$0xff] }
  0x74   : > { %440 = vmatprep.subr.mxu0 %v355_v41  ;;  %511 = vmatprep.subr.mxu1 %v357_v42  ;;  %v333_v1 = vld [vmem:[%s1465_s1] sm:$0xff]  ;;  %v595_v14 = vld [vmem:[#allocation9 + $0xe0] sm:$0xff] }
  0x75   : > { %441 = vmatpush1.msra.mxu0 %v354_v43  ;;  %512 = vmatpush1.msra.mxu1 %v356_v44  ;;  %v598_v2 = vld [vmem:[#allocation9 + $0xf8] sm:$0xff]  ;;  %v597_v6 = vld [vmem:[#allocation9 + $0xf0] sm:$0xff]  ;;  %v596_v10 = vld [vmem:[#allocation9 + $0xe8] sm:$0xff] }
  0x76   : > { %442 = vmatprep.subr.mxu0 %v351_v45  ;;  %513 = vmatprep.subr.mxu1 %v353_v46  ;;  %v630_v3 = vld [vmem:[#allocation9 + $0x1f8] sm:$0xff]  ;;  %v629_v7 = vld [vmem:[#allocation9 + $0x1f0] sm:$0xff]  ;;  %v628_v11 = vld [vmem:[#allocation9 + $0x1e8] sm:$0xff] }
  0x77   : > { %443 = vmatpush1.msra.mxu0 %v350_v47  ;;  %514 = vmatpush1.msra.mxu1 %v352_v48  ;;  %v582_v4 = vld [vmem:[#allocation9 + $0x78] sm:$0xff]  ;;  %v581_v8 = vld [vmem:[#allocation9 + $0x70] sm:$0xff]  ;;  %v580_v12 = vld [vmem:[#allocation9 + $0x68] sm:$0xff] }
  0x78   : > { %444 = vmatprep.subr.mxu0 %v347_v49  ;;  %515 = vmatprep.subr.mxu1 %v349_v50  ;;  %v614_v5 = vld [vmem:[#allocation9 + $0x178] sm:$0xff]  ;;  %v613_v9 = vld [vmem:[#allocation9 + $0x170] sm:$0xff]  ;;  %v612_v13 = vld [vmem:[#allocation9 + $0x168] sm:$0xff] }
  0x79   : > { %445 = vmatpush1.msra.mxu0 %v346_v51  ;;  %516 = vmatpush1.msra.mxu1 %v348_v52  ;;  %v627_v15 = vld [vmem:[#allocation9 + $0x1e0] sm:$0xff]  ;;  %v594_v18 = vld [vmem:[#allocation9 + $0xd8] sm:$0xff]  ;;  %v593_v22 = vld [vmem:[#allocation9 + $0xd0] sm:$0xff] }
  0x7a   : > { %446 = vmatprep.subr.mxu0 %v343_v53  ;;  %517 = vmatprep.subr.mxu1 %v345_v54  ;;  %v579_v16 = vld [vmem:[#allocation9 + $0x60] sm:$0xff]  ;;  %v626_v19 = vld [vmem:[#allocation9 + $0x1d8] sm:$0xff]  ;;  %v625_v23 = vld [vmem:[#allocation9 + $0x1d0] sm:$0xff] }
  0x7b   : > { %447 = vmatpush1.msra.mxu0 %v342_v55  ;;  %518 = vmatpush1.msra.mxu1 %v344_v56  ;;  %v611_v17 = vld [vmem:[#allocation9 + $0x160] sm:$0xff]  ;;  %v578_v20 = vld [vmem:[#allocation9 + $0x58] sm:$0xff]  ;;  %v577_v24 = vld [vmem:[#allocation9 + $0x50] sm:$0xff] }
  0x7c   : > { %448 = vmatprep.subr.mxu0 %v339_v57  ;;  %519 = vmatprep.subr.mxu1 %v341_v58  ;;  %v610_v21 = vld [vmem:[#allocation9 + $0x158] sm:$0xff]  ;;  %v609_v25 = vld [vmem:[#allocation9 + $0x150] sm:$0xff]  ;;  %v592_v26 = vld [vmem:[#allocation9 + $0xc8] sm:$0xff] }
  0x7d   : > { %449 = vmatpush1.msra.mxu0 %v338_v59  ;;  %520 = vmatpush1.msra.mxu1 %v340_v60  ;;  %v624_v27 = vld [vmem:[#allocation9 + $0x1c8] sm:$0xff]  ;;  %v591_v30 = vld [vmem:[#allocation9 + $0xc0] sm:$0xff]  ;;  %v590_v34 = vld [vmem:[#allocation9 + $0xb8] sm:$0xff] }
  0x7e   : > { %450 = vmatprep.subr.mxu0 %v335_v61  ;;  %521 = vmatprep.subr.mxu1 %v337_v62  ;;  %v576_v28 = vld [vmem:[#allocation9 + $0x48] sm:$0xff]  ;;  %v623_v31 = vld [vmem:[#allocation9 + $0x1c0] sm:$0xff]  ;;  %v622_v35 = vld [vmem:[#allocation9 + $0x1b8] sm:$0xff] }
  0x7f   : > { %451 = vmatpush1.msra.mxu0 %v334_v63  ;;  %522 = vmatpush1.msra.mxu1 %v336_v0  ;;  %v608_v29 = vld [vmem:[#allocation9 + $0x148] sm:$0xff]  ;;  %v575_v32 = vld [vmem:[#allocation9 + $0x40] sm:$0xff]  ;;  %v574_v36 = vld [vmem:[#allocation9 + $0x38] sm:$0xff] }
  0x80   : > { %485 = vmatmul.mubr.f32.vlgmr.msra.gmra.mxu0 %v333_v1  ;;  %556 = vmatmul.mubr.f32.vlgmr.msra.gmra.mxu1 %v333_v1  ;;  %v607_v33 = vld [vmem:[#allocation9 + $0x140] sm:$0xff]  ;;  %v606_v37 = vld [vmem:[#allocation9 + $0x138] sm:$0xff]  ;;  %v589_v38 = vld [vmem:[#allocation9 + $0xb0] sm:$0xff] }
  0x81   : > { %925 = vmatprep.subr.mxu0 %v598_v2  ;;  %960 = vmatprep.subr.mxu1 %v630_v3  ;;  %v621_v39 = vld [vmem:[#allocation9 + $0x1b0] sm:$0xff]  ;;  %v588_v42 = vld [vmem:[#allocation9 + $0xa8] sm:$0xff]  ;;  %v587_v46 = vld [vmem:[#allocation9 + $0xa0] sm:$0xff]  ;;  %v400_v2 = vlaneseq }
  0x82   : > { %926 = vmatpush3.msra.mxu0 %v582_v4  ;;  %961 = vmatpush3.msra.mxu1 %v614_v5  ;;  %v573_v40 = vld [vmem:[#allocation9 + $0x30] sm:$0xff]  ;;  %v620_v43 = vld [vmem:[#allocation9 + $0x1a8] sm:$0xff]  ;;  %v619_v47 = vld [vmem:[#allocation9 + $0x1a0] sm:$0xff] }
  0x83   : > { %927 = vmatprep.subr.mxu0 %v597_v6  ;;  %962 = vmatprep.subr.mxu1 %v629_v7  ;;  %v605_v41 = vld [vmem:[#allocation9 + $0x130] sm:$0xff]  ;;  %v572_v44 = vld [vmem:[#allocation9 + $0x28] sm:$0xff]  ;;  %v571_v48 = vld [vmem:[#allocation9 + $0x20] sm:$0xff]  ;;  %v401_v3 = vshrl.u32 %v400_v2, 7 }
  0x84   : > { %928 = vmatpush3.msra.mxu0 %v581_v8  ;;  %963 = vmatpush3.msra.mxu1 %v613_v9  ;;  %v604_v45 = vld [vmem:[#allocation9 + $0x128] sm:$0xff]  ;;  %v603_v49 = vld [vmem:[#allocation9 + $0x120] sm:$0xff]  ;;  %v586_v50 = vld [vmem:[#allocation9 + $0x98] sm:$0xff] }
  0x85   : > { %929 = vmatprep.subr.mxu0 %v596_v10  ;;  %964 = vmatprep.subr.mxu1 %v628_v11  ;;  %v618_v51 = vld [vmem:[#allocation9 + $0x198] sm:$0xff]  ;;  %v585_v54 = vld [vmem:[#allocation9 + $0x90] sm:$0xff]  ;;  %v584_v58 = vld [vmem:[#allocation9 + $0x88] sm:$0xff]  ;;  %v402_v4 = vsub.s32 0, %v401_v3  ;;  %v410_v5 = vsub.s32 2, %v401_v3  ;;  %v406_v7 = vsub.s32 1, %v401_v3 }
  0x86   : > { %930 = vmatpush3.msra.mxu0 %v580_v12  ;;  %965 = vmatpush3.msra.mxu1 %v612_v13  ;;  %v570_v52 = vld [vmem:[#allocation9 + $0x18] sm:$0xff]  ;;  %v617_v55 = vld [vmem:[#allocation9 + $0x190] sm:$0xff]  ;;  %v616_v59 = vld [vmem:[#allocation9 + $0x188] sm:$0xff]  ;;  %v414_v8 = vsub.s32 3, %v401_v3 }
  0x87   : > { %931 = vmatprep.subr.mxu0 %v595_v14  ;;  %966 = vmatprep.subr.mxu1 %v627_v15  ;;  %v602_v53 = vld [vmem:[#allocation9 + $0x118] sm:$0xff]  ;;  %v569_v56 = vld [vmem:[#allocation9 + $0x10] sm:$0xff]  ;;  %v568_v60 = vld [vmem:[#allocation9 + $0x8] sm:$0xff] }
  0x88   : > { %932 = vmatpush3.msra.mxu0 %v579_v16  ;;  %967 = vmatpush3.msra.mxu1 %v611_v17  ;;  %v601_v57 = vld [vmem:[#allocation9 + $0x110] sm:$0xff]  ;;  %v600_v61 = vld [vmem:[#allocation9 + $0x108] sm:$0xff]  ;;  %v583_v62 = vld [vmem:[#allocation9 + $0x80] sm:$0xff] }
  0x89   : > { %933 = vmatprep.subr.mxu0 %v594_v18  ;;  %968 = vmatprep.subr.mxu1 %v626_v19  ;;  %v615_v63 = vld [vmem:[#allocation9 + $0x180] sm:$0xff]  ;;  %v398_v6 = vld [vmem:[#allocation8] sm:$0xf] }
  0x8a   : > { %934 = vmatpush3.msra.mxu0 %v578_v20  ;;  %969 = vmatpush3.msra.mxu1 %v610_v21  ;;  %v567_v0 = vld [vmem:[#allocation9] sm:$0xff]  ;;  %v403_v9 = vrot.slane %v398_v6, %v402_v4  ;;  %v411_v10 = vrot.slane %v398_v6, %v410_v5  ;;  %v407_v11 = vrot.slane %v398_v6, %v406_v7 }
  0x8b   : > { %935 = vmatprep.subr.mxu0 %v593_v22  ;;  %970 = vmatprep.subr.mxu1 %v625_v23  ;;  %v599_v1 = vld [vmem:[#allocation9 + $0x100] sm:$0xff]  ;;  %v415_v12 = vrot.slane %v398_v6, %v414_v8 }
  0x8c   : > { %936 = vmatpush3.msra.mxu0 %v577_v24  ;;  %971 = vmatpush3.msra.mxu1 %v609_v25 }
  0x8d   : > { %937 = vmatprep.subr.mxu0 %v592_v26  ;;  %972 = vmatprep.subr.mxu1 %v624_v27 }
  0x8e   : > { %938 = vmatpush3.msra.mxu0 %v576_v28  ;;  %973 = vmatpush3.msra.mxu1 %v608_v29 }
  0x8f   : > { %939 = vmatprep.subr.mxu0 %v591_v30  ;;  %974 = vmatprep.subr.mxu1 %v623_v31  ;;  %v920_v31 = vld [vmem:[%s1529_s4] ss:$0 sm:$0xff] }
  0x90   : > { %940 = vmatpush3.msra.mxu0 %v575_v32  ;;  %975 = vmatpush3.msra.mxu1 %v607_v33 }
  0x91   : > { %941 = vmatprep.subr.mxu0 %v590_v34  ;;  %976 = vmatprep.subr.mxu1 %v622_v35 }
  0x92   : > { %942 = vmatpush3.msra.mxu0 %v574_v36  ;;  %977 = vmatpush3.msra.mxu1 %v606_v37 }
  0x93   : > { %943 = vmatprep.subr.mxu0 %v589_v38  ;;  %978 = vmatprep.subr.mxu1 %v621_v39 }
  0x94   : > { %944 = vmatpush3.msra.mxu0 %v573_v40  ;;  %979 = vmatpush3.msra.mxu1 %v605_v41 }
  0x95   : > { %945 = vmatprep.subr.mxu0 %v588_v42  ;;  %980 = vmatprep.subr.mxu1 %v620_v43 }
  0x96   : > { %946 = vmatpush3.msra.mxu0 %v572_v44  ;;  %981 = vmatpush3.msra.mxu1 %v604_v45 }
  0x97   : > { %947 = vmatprep.subr.mxu0 %v587_v46  ;;  %982 = vmatprep.subr.mxu1 %v619_v47 }
  0x98   : > { %948 = vmatpush3.msra.mxu0 %v571_v48  ;;  %983 = vmatpush3.msra.mxu1 %v603_v49 }
  0x99   : > { %949 = vmatprep.subr.mxu0 %v586_v50  ;;  %984 = vmatprep.subr.mxu1 %v618_v51 }
  0x9a   : > { %950 = vmatpush3.msra.mxu0 %v570_v52  ;;  %985 = vmatpush3.msra.mxu1 %v602_v53 }
  0x9b   : > { %951 = vmatprep.subr.mxu0 %v585_v54  ;;  %986 = vmatprep.subr.mxu1 %v617_v55 }
  0x9c   : > { %952 = vmatpush3.msra.mxu0 %v569_v56  ;;  %987 = vmatpush3.msra.mxu1 %v601_v57 }
  0x9d   : > { %953 = vmatprep.subr.mxu0 %v584_v58  ;;  %988 = vmatprep.subr.mxu1 %v616_v59 }
  0x9e   : > { %954 = vmatpush3.msra.mxu0 %v568_v60  ;;  %989 = vmatpush3.msra.mxu1 %v600_v61 }
  0x9f   : > { %955 = vmatprep.subr.mxu0 %v583_v62  ;;  %990 = vmatprep.subr.mxu1 %v615_v63 }
  0xa0   : > { %956 = vmatpush3.msra.mxu0 %v567_v0  ;;  %991 = vmatpush3.msra.mxu1 %v599_v1 }
 0x140   : > { %v486_v13 = vpop.f32.mrf.mxu0  ;;  %v557_v14 = vpop.f32.mrf.mxu1 }
 0x141   : > { %v487_v15 = vadd.f32 %v486_v13, %v403_v9  ;;  %v558_v16 = vadd.f32 %v557_v14, %v411_v10 }
 0x142   : > { %v488_v17 = vpop.f32.mrf.mxu0  ;;  %v559_v18 = vpop.f32.mrf.mxu1 }
 0x143   : > { %v489_v19 = vadd.f32 %v488_v17, %v407_v11  ;;  %v560_v20 = vadd.f32 %v559_v18, %v415_v12  ;;  %v562_v23 = vmax.f32 %v487_v15, 0.0  ;;  %v564_v24 = vmax.f32 %v558_v16, 0.0 }
 0x145   : > { %v563_v21 = vmax.f32 %v489_v19, 0.0  ;;  %v565_v22 = vmax.f32 %v560_v20, 0.0 }
 0x147   : > { %695 = vmatprep.mubr.f32.mxu0 %v563_v21  ;;  %765 = vmatprep.mubr.f32.mxu1 %v565_v22 }
 0x148   : > { %696 = vmatmul.mubr.f32.vlgmr.msra.gmra.mxu0 %v562_v23  ;;  %766 = vmatmul.mubr.f32.vlgmr.msra.gmra.mxu1 %v564_v24 }
 0x208   : > { %v957_v25 = vpop.f32.mrf.mxu0  ;;  %v992_v26 = vpop.f32.mrf.mxu1 }
 0x20a   : > { %v958_v27 = vpop.f32.mrf.mxu0  ;;  %v993_v28 = vpop.f32.mrf.mxu1 }
 0x20b   : > { %v959_v29 = vadd.f32 %v958_v27, %v957_v25  ;;  %v994_v30 = vadd.f32 %v993_v28, %v992_v26 }
 0x20d   : > { %v768_v32 = vadd.f32 %v994_v30, %v959_v29 }
 0x20f   : > { %v771_v33 = vadd.f32 %v920_v31, %v768_v32 }
 0x211   : > { %777 = vst [vmem:[%s317_s7] sm:$0xff] %v771_v33 }
 0x212   : > { %1212 = shalt.err (!%p1209_p13)
}
 0x213   : > { %s1213_s12 = scalar_lea.hbm %s790_s11, 128  ;;  %s1217_s1 = scalar_lea.hbm %s1530_s5, 256 }
 0x214   : > { %p1214_p1 = scmp.ne.s32.totalorder %s790_s11, %s1213_s12  ;;  %p1218_p12 = scmp.lt.s32.totalorder %s790_s11, %s1530_s5 }
 0x215   : > { %p1219_p5 = scmp.lt.s32.totalorder %s1217_s1, %s1213_s12 }
 0x216   : > { %p1215_p4 = pnand %p1214_p1, %p1429_p0 }
 0x217   : > { %p1220_p3 = por %p1219_p5, %p1218_p12 }
 0x218   : > { %p1216_p8 = pneg %p1215_p4 }
 0x21a   : > { %p1221_p10 = pnand %p1220_p3, %p1216_p8 }
 0x21c   : > { %1224 = shalt.err (!%p1221_p10)
}
 0x21d   : > { %1009 = dma.vmem_to_hbm [thread:$0]  (%p1429_p0), %s793_s27, 128, %s790_s11, %s779_s13  }
 0x21e PF: > { %s804_s30 = sand.u32 1, %s1267_s18   ;;  %p1548_p2 = scmp.ne.s32.totalorder %s1539_s29, 0 }
 0x21f   : > { %p1549_p11 = scmp.ge.s32.totalorder %s1287_s23, 2  ;;  %s805_s7 = scalar_lea.sflag [#allocation5], %s804_s30 }
 0x221   : > { %p1026_p7 = pnand %p1549_p11, %p1548_p2 }
 0x223   : > { %p1027_p6 = pneg %p1026_p7 }
 0x225   : > { %1262 = dma.done.wait (%p1027_p6), %s805_s7, 128  }
 0x226   : > { %1264 = vsyncadd (%p1027_p6), %s805_s7, 4294967168  ;;  %s23_s23 = sadd.s32 1, %s1287_s23   ;;  %s1550_s18 = smov %s1271_s19 }
 0x227   : > { %p20_p9 = scmp.ge.s32.totalorder %s23_s23, 4   ;;  %s1551_s19 = smov %s1275_s20 }
 0x228   : > { %s1552_s20 = smov %s1441_s25  ;;  %s1553_s21 = smov %s1283_s22 }
 0x229   : > { %s1554_s22 = smov %s1556_s15  ;;  %22 = sbr.rel (!%p20_p9) target bundleno = 10 (0xa), region = 108 }
 0x22e   :  { %810 = vsyncpa [#allocation4], 1 }
 0x22f   :  { %812 = vsyncpa [#allocation4 + $0x1], 1 }
 0x230   :  { %813 = vsyncpa [#allocation7], 1 }
 0x231   :  { %814 = vsyncpa [#allocation10], 1 }
 0x232   :  { %815 = vsyncpa [#allocation5], 1 }
 0x233   :  { %817 = vsyncpa [#allocation5 + $0x1], 1 }

</bundles_post_ra>
